<compile_context>
chip_gen: v5e
topology: v5e:2x2
jax: 0.10.0
libtpu: 0.0.40
codegen_flags: <defaults>
</compile_context>

<pallas_src>
import jax
import jax.numpy as jnp
from jax.experimental import pallas as pl
from jax.experimental.pallas import tpu as pltpu


# ----------------------------------------------------------------------------
# Kernel
# ----------------------------------------------------------------------------
def _onering_linear_kernel(mat_ref, w_ref, b_ref, o_ref):
    # mat_ref: (TILE_N, K)   w_ref: (K, C_out_pad)   b_ref: (1, C_out_pad)
    # o_ref:   (TILE_N, C_out_pad)
    acc = jnp.dot(mat_ref[...], w_ref[...], preferred_element_type=jnp.float32)
    acc = acc + b_ref[...].astype(jnp.float32)      # bias broadcast in f32
    o_ref[...] = acc.astype(o_ref.dtype)


# ----------------------------------------------------------------------------
# Sizing helpers
# ----------------------------------------------------------------------------
def _round_up(x, m):
    return ((x + m - 1) // m) * m


def _vmem_budget():
    """(tile-chooser budget, vmem_limit_bytes) derived from the local chip.

    Uses half the physical VMEM for the python-side tile budget (conservative:
    the resident weight is still counted double-buffered) and 3/4 for the
    Mosaic scoped limit.  Falls back to v7x's 64 MiB if the query fails.
    """
    cap = 64 * 1024 * 1024
    try:
        info = pltpu.get_tpu_info()
        cap_attr = getattr(info, "vmem_capacity_bytes", None)
        if cap_attr:
            cap = int(cap_attr)
    except Exception:
        pass
    return cap // 2, (cap * 3) // 4


def _choose_tile_n(n, k, c_out_pad, lhs_bytes, out_bytes, budget_bytes,
                   weight_buffers=2):
    """Largest N tile whose pipeline buffers fit `budget_bytes` of VMEM.

    Accounts for TPU (8,128) layout padding: the last dim of every VMEM tile is
    padded to a multiple of 128 lanes and the second-to-last to 8 sublanes
    (e.g. a (tile_n, 28) f32 LHS tile really occupies tile_n*128*4 bytes).
    """
    if n <= 8:
        return n
    k_lane = _round_up(k, 128)   # LHS tile lane padding
    k_sub = _round_up(k, 8)      # resident-weight sublane padding
    for t in (8192, 4096, 2048, 1024, 512, 256, 128, 64, 32, 16, 8):
        if t > n:
            continue
        lhs = 2 * t * k_lane * lhs_bytes                       # double-buffered LHS
        w = weight_buffers * k_sub * c_out_pad * lhs_bytes     # grid-resident weight
        out = 2 * t * c_out_pad * out_bytes                    # double-buffered out
        b = weight_buffers * 8 * c_out_pad * 4                 # bias (sublane-padded)
        if lhs + w + out + b <= budget_bytes:
            return t
    return 8


# ----------------------------------------------------------------------------
# One-time parameter preparation (hoist out of the per-call forward path)
# ----------------------------------------------------------------------------
def prepare_params(weight, bias, *, compute_dtype=None, pad_out_to_lanes=True):
    """Transpose, lane-pad and (optionally) cast the Linear parameters once.

    weight: (C_out, K), bias: (C_out,).  Returns (w_t, b2) with
    w_t: (K, C_out_pad) in `compute_dtype`, b2: (1, C_out_pad) f32, where
    C_out_pad = round_up(C_out, 128) when pad_out_to_lanes (lane-dense stores).
    """
    c_out, _k = weight.shape
    c_out_pad = _round_up(c_out, 128) if pad_out_to_lanes else c_out
    w_t = weight.T                                    # (K, C_out)
    b = bias
    if c_out_pad != c_out:
        w_t = jnp.pad(w_t, ((0, 0), (0, c_out_pad - c_out)))
        b = jnp.pad(b, (0, c_out_pad - c_out))
    if compute_dtype is not None:
        w_t = w_t.astype(compute_dtype)
    b2 = b.reshape(1, c_out_pad).astype(jnp.float32)  # bias added in f32
    return w_t, b2


# ----------------------------------------------------------------------------
# Forward
# ----------------------------------------------------------------------------
def graph_one_ring_conv(x, neigh_orders, weight, bias, *, num_neighbors=7,
                        tile_n=None, use_bf16=False, pad_out_to_lanes=True,
                        prepared_params=None, single_buffer_weight=False):
    """x: (N, C_in); neigh_orders: (num_neighbors*N,) int32 with values in
    [0, N); weight: (C_out, num_neighbors*C_in); bias: (C_out,).
    Returns (N, C_out), identical to the PyTorch module's forward."""
    N, C_in = x.shape
    C_out = weight.shape[0]
    K = num_neighbors * C_in
    assert weight.shape == (C_out, K)

    out_dtype = x.dtype
    compute_dtype = jnp.bfloat16 if use_bf16 else x.dtype

    if prepared_params is None:
        prepared_params = prepare_params(weight, bias,
                                         compute_dtype=compute_dtype,
                                         pad_out_to_lanes=pad_out_to_lanes)
    w_t, b2 = prepared_params
    assert w_t.shape[0] == K
    c_out_pad = w_t.shape[1]

    # --- neighbor gather + row-major view (exact PyTorch semantics) ----------
    # Cast *before* the gather so the cast fuses into it (halves the HBM stream
    # of the 7x-expanded LHS when use_bf16).
    # NOTE: jnp.take clips out-of-range indices where PyTorch would raise;
    # neigh_orders is assumed to be in [0, N) (no -1 padding sentinels).
    # TODO(synk): fuse this gather into the Pallas kernel (x resident in VMEM +
    # in-kernel dynamic row gather) once a vectorized dynamic sublane gather
    # lowers reliably in Mosaic; until then allow_input_fusion below lets XLA
    # try to fold the gather/reshape producer into the kernel's input pipeline.
    xg = x.astype(compute_dtype)
    mat = jnp.take(xg, neigh_orders.reshape(-1), axis=0).reshape(N, K)

    # --- tile / VMEM budgeting (padding- and generation-aware) ---------------
    lhs_bytes = jnp.dtype(compute_dtype).itemsize
    out_bytes = jnp.dtype(out_dtype).itemsize
    budget, vmem_limit = _vmem_budget()
    weight_buffers = 1 if single_buffer_weight else 2
    if tile_n is None:
        tile_n = _choose_tile_n(N, K, c_out_pad, lhs_bytes, out_bytes, budget,
                                weight_buffers=weight_buffers)
        if N >= 16:
            # >=2 grid steps so the "parallel" axis can shard across both
            # TensorCores on v7x (cheap elsewhere: ~0.35us per extra step).
            tile_n = max(8, min(tile_n, _round_up(pl.cdiv(N, 2), 8)))
    grid = (pl.cdiv(N, tile_n),)

    # Grid-resident weight/bias (constant index_map).  Optionally single-buffer
    # them: their block never changes, so one buffer suffices and frees VMEM for
    # a larger LHS tile on large-K layers (v7x).
    resident = dict(pipeline_mode=pl.Buffered(1)) if single_buffer_weight else {}

    cost = pl.CostEstimate(
        flops=2 * N * K * c_out_pad,
        transcendentals=0,
        bytes_accessed=(N * K * lhs_bytes            # gathered LHS
                        + K * c_out_pad * lhs_bytes  # weight
                        + c_out_pad * 4              # bias
                        + N * c_out_pad * out_bytes),  # output
    )

    out = pl.pallas_call(
        _onering_linear_kernel,
        out_shape=jax.ShapeDtypeStruct((N, c_out_pad), out_dtype),
        grid=grid,
        in_specs=[
            pl.BlockSpec((tile_n, K), lambda i: (i, 0)),                 # LHS tile
            pl.BlockSpec((K, c_out_pad), lambda i: (0, 0), **resident),  # weight
            pl.BlockSpec((1, c_out_pad), lambda i: (0, 0), **resident),  # bias
        ],
        out_specs=pl.BlockSpec((tile_n, c_out_pad), lambda i: (i, 0)),
        compiler_params=pltpu.CompilerParams(
            dimension_semantics=("parallel",),        # shard N over TCs (v7x)
            vmem_limit_bytes=int(vmem_limit),
            # Let XLA fold the gather/reshape producer of `mat` into the kernel
            # input pipeline if it can (no-op otherwise).
            allow_input_fusion=[True, False, False],
        ),
        cost_estimate=cost,
    )(mat, w_t, b2)

    if c_out_pad != C_out:
        out = out[:, :C_out]   # drop lane padding
    return out


# ----------------------------------------------------------------------------
# Self-test
# ----------------------------------------------------------------------------
if __name__ == "__main__":
    # Small shapes implied by the module: N vertices, feature-last.
    N, C_in, C_out, NUM_NEIGH = 256, 4, 8, 7

    key = jax.random.PRNGKey(0)
    kx, kw, kb = jax.random.split(key, 3)

    x = jax.random.normal(kx, (N, C_in), dtype=jnp.float32)          # (N, C_in)

    # deterministic synthetic 1-ring: vertex n's 7 neighbors are (n..n+6) mod N
    neigh = (jnp.arange(N)[:, None] + jnp.arange(NUM_NEIGH)[None, :]) % N
    neigh_orders = neigh.reshape(-1).astype(jnp.int32)               # (7*N,)

    # deterministic nn.Linear(7*C_in, C_out)-style init
    bound = 1.0 / jnp.sqrt(jnp.float32(NUM_NEIGH * C_in))
    weight = jax.random.uniform(kw, (C_out, NUM_NEIGH * C_in),
                                minval=-bound, maxval=bound, dtype=jnp.float32)
    bias = jax.random.uniform(kb, (C_out,),
                              minval=-bound, maxval=bound, dtype=jnp.float32)

    # pure-JAX reference with identical semantics to the PyTorch module
    mat_ref = x[neigh_orders].reshape(N, NUM_NEIGH * C_in)
    ref = mat_ref @ weight.T + bias

    # 1) explicit small tile (forces a multi-step grid), f32 path
    out = graph_one_ring_conv(x, neigh_orders, weight, bias,
                              num_neighbors=NUM_NEIGH, tile_n=64)
    out = jax.block_until_ready(out)
    assert out.shape == (N, C_out)
    assert jnp.allclose(out, ref, atol=1e-5, rtol=1e-5)

    # 2) auto tile (exercises the padding/VMEM-aware chooser + >=2-step cap)
    out_auto = jax.block_until_ready(
        graph_one_ring_conv(x, neigh_orders, weight, bias,
                            num_neighbors=NUM_NEIGH))
    assert jnp.allclose(out_auto, ref, atol=1e-5, rtol=1e-5)

    # 3) bf16 operands with f32 accumulation (looser tolerance)
    out_bf16 = jax.block_until_ready(
        graph_one_ring_conv(x, neigh_orders, weight, bias,
                            num_neighbors=NUM_NEIGH, use_bf16=True))
    assert jnp.allclose(out_bf16, ref, atol=5e-2, rtol=5e-2)

    print("KERNEL_OK")
</pallas_src>

<mosaic_0001>
module attributes {stable_mosaic.version = 11 : i64} {
  func.func @_onering_linear_kernel(%arg0: i32, %arg1: memref<64x28xf32, #tpu.memory_space<vmem>>, %arg2: memref<28x128xf32, #tpu.memory_space<vmem>>, %arg3: memref<1x128xf32, #tpu.memory_space<vmem>>, %arg4: memref<64x128xf32, #tpu.memory_space<vmem>>) attributes {dimension_semantics = [#tpu.dimension_semantics<parallel>], iteration_bounds = array<i64: 4>, scalar_prefetch = 0 : i64, scratch_operands = 0 : i64, tpu.core_type = #tpu.core_type<tc>, window_params = [{transform_indices = @transform_0, window_bounds = array<i64: 64, 28>}, {pipeline_mode = #tpu.pipeline_mode<synchronous>, transform_indices = @transform_1, window_bounds = array<i64: 28, 128>}, {pipeline_mode = #tpu.pipeline_mode<synchronous>, transform_indices = @transform_2, window_bounds = array<i64: 1, 128>}, {transform_indices = @transform_3, window_bounds = array<i64: 64, 128>}]} {
    %c0 = arith.constant 0 : index
    %c0_0 = arith.constant 0 : index
    %0 = vector.load %arg1[%c0, %c0_0] : memref<64x28xf32, #tpu.memory_space<vmem>>, vector<64x28xf32>
    %c0_1 = arith.constant 0 : index
    %c0_2 = arith.constant 0 : index
    %1 = vector.load %arg2[%c0_1, %c0_2] : memref<28x128xf32, #tpu.memory_space<vmem>>, vector<28x128xf32>
    %cst = arith.constant dense<0.000000e+00> : vector<64x128xf32>
    %2 = tpu.matmul %0, %1, %cst {dimension_numbers = #tpu.dot_dimension_numbers<[1], [0], [0], [1], [0, 0, 1, 1], [], []>} : vector<64x28xf32>, vector<28x128xf32>, vector<64x128xf32> -> vector<64x128xf32>
    %c0_3 = arith.constant 0 : index
    %c0_4 = arith.constant 0 : index
    %3 = vector.load %arg3[%c0_3, %c0_4] : memref<1x128xf32, #tpu.memory_space<vmem>>, vector<1x128xf32>
    %4 = vector.broadcast %3 : vector<1x128xf32> to vector<64x128xf32>
    %5 = arith.addf %2, %4 : vector<64x128xf32>
    %c0_5 = arith.constant 0 : index
    %c0_6 = arith.constant 0 : index
    %6 = vector.load %arg4[%c0_5, %c0_6] : memref<64x128xf32, #tpu.memory_space<vmem>>, vector<64x128xf32>
    tpu.vector_store %arg4[%c0_5, %c0_6], %5 {strides = array<i32>} : memref<64x128xf32, #tpu.memory_space<vmem>>, vector<64x128xf32>,
    return
  }
  func.func @transform_0(%arg0: i32) -> (i32, i32) {
    %c0_i32 = arith.constant 0 : i32
    %c0_i32_0 = arith.constant 0 : i32
    return %arg0, %c0_i32 : i32, i32
  }
  func.func @transform_1(%arg0: i32) -> (i32, i32) {
    %c0_i32 = arith.constant 0 : i32
    %c0_i32_0 = arith.constant 0 : i32
    %c0_i32_1 = arith.constant 0 : i32
    return %c0_i32, %c0_i32_0 : i32, i32
  }
  func.func @transform_2(%arg0: i32) -> (i32, i32) {
    %c0_i32 = arith.constant 0 : i32
    %c0_i32_0 = arith.constant 0 : i32
    %c0_i32_1 = arith.constant 0 : i32
    return %c0_i32, %c0_i32_0 : i32, i32
  }
  func.func @transform_3(%arg0: i32) -> (i32, i32) {
    %c0_i32 = arith.constant 0 : i32
    %c0_i32_0 = arith.constant 0 : i32
    return %arg0, %c0_i32 : i32, i32
  }
}

</mosaic_0001>

<bundles_post_ra>
// kernel: tpu_custom_call.1
= control target key start
LH: loop header
LB: loop body
LE: loop exit
PB: predicated region body
PF: predicated region fallthrough
CT: control target
= control target key end

     0   :  { %8 = vsyncpa [#allocation3], 0  ;;  %s617_s0 = inlined_call_operand.vmem [shape: f32[256,28], index: 0, kind: input, shape index: {}]   ;;  %s618_s1 = inlined_call_operand.vmem [shape: f32[28,128], index: 1, kind: input, shape index: {}]   ;;  %s619_s2 = inlined_call_operand.vmem [shape: f32[1,128], index: 2, kind: input, shape index: {}]   ;;  %s620_s3 = inlined_call_operand.hbm [shape: f32[256,128], index: 3, kind: output, shape index: {}]  }
   0x1   :  { %10 = vsyncpa [#allocation3 + $0x1], 0  ;;  %s506_s12 = smov 0   ;;  %s508_s13 = smov 0  }
   0x2   :  { %s510_s14 = smov 0   ;;  %s512_s15 = smov 0  }
   0x3 LB: > { %s527_s16 = sadd.s32 4294967295, %s482_s15   ;;  %s344_s17 = sadd.s32 4294967294, %s482_s15   ;;  %s482_s15 = sphi %s512_s15, %s626_s15   ;;  %s478_s14 = sphi %s510_s14, %s625_s14   ;;  %s474_s13 = sphi %s508_s13, %s624_s13   ;;  %s470_s12 = sphi %s506_s12, %s623_s12  }
   0x4   : > { %s531_s18 = sadd.s32 1, %s482_s15   ;;  %s91_s19 = sadd.s32 1, %s478_s14 }
   0x5   : > { %s88_s20 = ssub.s32 %s482_s15, %s531_s18  ;;  %p101_p0 = scmp.ne.s32.totalorder %s478_s14, %s474_s13 }
   0x6   : > { %p89_p1 = scmp.eq.s32.totalorder %s88_s20, 0  ;;  %p102_p2 = scmp.eq.s32.totalorder %s527_s16, 3 }
   0x7   : > { %p107_p3 = scmp.ne.s32.totalorder %s474_s13, %s470_s12  ;;  %p108_p4 = scmp.eq.s32.totalorder %s344_s17, 3 }
   0x8   : > { %s542_s21 = scalar_select %p89_p1, %s478_s14, %s91_s19  }
   0x9   : > { %p544_p5 = por %p102_p2, %p101_p0  ;;  %p548_p6 = por %p108_p4, %p107_p3 }
   0xa   : > { %p347_p7 = scmp.ge.s32.totalorder %s482_s15, 1  ;;  %p141_p8 = scmp.lt.s32.totalorder %s482_s15, 5 }
   0xc   : > { %p142_p9 = pnand %p347_p7, %p141_p8 }
   0xd   : > { %s349_s28 = sshll.u32 (!%p142_p9), %s527_s16, 3  ;;  %s162_s10 = sand.u32 (!%p142_p9), 1, %s474_s13  }
   0xe   : > { %145 = sbr.rel (%p142_p9) target bundleno = 174 (0xae), region = 32  ;;  %p166_p10 = scmp.lt.s32.totalorder (!%p142_p9), %s349_s28, 31 }
   0xf   : > { %s348_s11 = sshll.u32 (!%p142_p9), %s162_s10, 6  ;;  %s365_s24 = sshll.u32 (!%p142_p9), %s527_s16, 6 }
  0x10   : > { %s164_s20 = scalar_lea.vmem (!%p142_p9), [#allocation2], %s348_s11  ;;  %s278_s27 = scalar_lea.hbm (!%p142_p9), %s620_s3, %s365_s24 }
  0x11   : > { %s281_s29 = sshll.u32 (!%p142_p9), %s278_s27, 4  ;;  %s267_s16 = scalar_lea.sflag (!%p142_p9), [#allocation3], %s162_s10  ;;  %s282_s29 = int_to_ptr.hbm [resolvable:$true] %s281_s29 }
  0x12   : > { %s434_s30 = sshra.s32 (!%p142_p9), %s282_s29, 4  ;;  %s440_s7 = scalar_lea.hbm (!%p142_p9), %s620_s3, 256  ;;  %s435_s30 = int_to_ptr.hbm [resolvable:$true] %s434_s30 }
  0x13   : > { %v183_v0 = vld [vmem:[%s618_s1 + $0x18] sm:$0xf]  ;;  %vm213_vm0 = vcmask 1043456   ;;  %v182_v1 = vld [vmem:[%s618_s1 + $0x10] sm:$0xff]  ;;  %v181_v2 = vld [vmem:[%s618_s1 + $0x8] sm:$0xff]  ;;  %s628_s28 = smov (!%p166_p10, %s349_s28), 31  ;;  %p441_p0 = scmp.lt.s32.totalorder %s435_s30, %s620_s3 }
  0x14   : > { %367 = vmatpush.msk.msra.mxu2 %vm213_vm0, %v183_v0  ;;  %368 = vmatpush.msk.msra.mxu3 %vm213_vm0, %v183_v0  ;;  %v180_v3 = vld [vmem:[%s618_s1] sm:$0xff]  ;;  %s350_s6 = sshll.u32 %s628_s28, 3  ;;  %vm188_vm1 = vcmask 228352   ;;  %s279_s28 = sshll.u32 %s164_s20, 4  ;;  %s280_s28 = int_to_ptr.vmem [resolvable:$true] %s279_s28 }
  0x15   : > { %351 = vmatpush.msk.msra.mxu0 %vm213_vm0, %v183_v0  ;;  %366 = vmatpush.msk.msra.mxu1 %vm213_vm0, %v183_v0  ;;  %s169_s9 = scalar_lea.vmem %s617_s0, %s350_s6  ;;  %v419_v12 = vld [vmem:[%s619_s2] ss:$0 sm:$0xff]  ;;  %s436_s4 = scalar_lea.hbm %s435_s30, 64 }
  0x16   : > { %370 = vmatpush.msra.mxu2 %v182_v1  ;;  %371 = vmatpush.msra.mxu3 %v182_v1  ;;  %v176_v4 = vld [vmem:[%s169_s9 + $0x20] sm:$0xff]  ;;  %v178_v5 = vld [vmem:[%s169_s9 + $0x30] sm:$0xff]  ;;  %v177_v8 = vld [vmem:[%s169_s9 + $0x28] sm:$0xff]  ;;  %p437_p11 = scmp.ne.s32.totalorder %s435_s30, %s436_s4  ;;  %p442_p1 = scmp.lt.s32.totalorder %s440_s7, %s436_s4 }
  0x17   : > { %230 = vmatpush.msra.mxu0 %v182_v1  ;;  %369 = vmatpush.msra.mxu1 %v182_v1  ;;  %v172_v6 = vld [vmem:[%s169_s9] sm:$0xff]  ;;  %v174_v7 = vld [vmem:[%s169_s9 + $0x10] sm:$0xff]  ;;  %v179_v9 = vld [vmem:[%s169_s9 + $0x38] sm:$0xff] }
  0x18   : > { %373 = vmatpush.msra.mxu2 %v181_v2  ;;  %374 = vmatpush.msra.mxu3 %v181_v2  ;;  %v173_v10 = vld [vmem:[%s169_s9 + $0x8] sm:$0xff]  ;;  %v175_v11 = vld [vmem:[%s169_s9 + $0x18] sm:$0xff]  ;;  %p438_p12 = pnand %p437_p11, %p544_p5  ;;  %p443_p2 = por %p442_p1, %p441_p0 }
  0x19   : > { %231 = vmatpush.msra.mxu0 %v181_v2  ;;  %372 = vmatpush.msra.mxu1 %v181_v2 }
  0x1a   : > { %376 = vmatpush.msra.mxu2 %v180_v3  ;;  %377 = vmatpush.msra.mxu3 %v180_v3  ;;  %p439_p13 = pneg %p438_p12 }
  0x1b   : > { %356 = vmatmul.msk.f32.vlgmr.msra.gmra.mxu2 %vm188_vm1, %v176_v4  ;;  %358 = vmatmul.msk.f32.vlgmr.msra.gmra.mxu3 %vm188_vm1, %v178_v5 }
  0x1c   : > { %232 = vmatpush.msra.mxu0 %v180_v3  ;;  %375 = vmatpush.msra.mxu1 %v180_v3  ;;  %p444_p3 = pnand %p443_p2, %p439_p13 }
  0x1d   : > { %352 = vmatmul.msk.f32.vlgmr.msra.gmra.mxu0 %vm188_vm1, %v172_v6  ;;  %354 = vmatmul.msk.f32.vlgmr.msra.gmra.mxu1 %vm188_vm1, %v174_v7 }
  0x23   : > { %357 = vmatmul.msk.f32.gmra.mxu2 %vm188_vm1, %v177_v8  ;;  %359 = vmatmul.msk.f32.gmra.mxu3 %vm188_vm1, %v179_v9 }
  0x25   : > { %353 = vmatmul.msk.f32.gmra.mxu0 %vm188_vm1, %v173_v10  ;;  %355 = vmatmul.msk.f32.gmra.mxu1 %vm188_vm1, %v175_v11 }
  0x9a   : > { %v234_v13 = vpop.f32.mrf.mxu0  ;;  %v240_v14 = vpop.f32.mrf.mxu1 }
  0x9b   : > { %v235_v15 = vadd.f32 %v419_v12, %v234_v13  ;;  %v241_v16 = vadd.f32 %v419_v12, %v240_v14 }
  0x9d   : > { %258 = vst [vmem:[%s164_s20] sm:$0xff] %v235_v15 }
  0x9e   : > { %260 = vst [vmem:[%s164_s20 + $0x10] sm:$0xff] %v241_v16  ;;  %v246_v17 = vpop.f32.mrf.mxu2  ;;  %v252_v18 = vpop.f32.mrf.mxu3 }
  0x9f   : > { %v247_v19 = vadd.f32 %v419_v12, %v246_v17  ;;  %v253_v20 = vadd.f32 %v419_v12, %v252_v18 }
  0xa1   : > { %262 = vst [vmem:[%s164_s20 + $0x20] sm:$0xff] %v247_v19 }
  0xa2   : > { %264 = vst [vmem:[%s164_s20 + $0x30] sm:$0xff] %v253_v20  ;;  %v237_v21 = vpop.f32.mrf.mxu0  ;;  %v243_v22 = vpop.f32.mrf.mxu1 }
  0xa3   : > { %v238_v23 = vadd.f32 %v419_v12, %v237_v21  ;;  %v244_v24 = vadd.f32 %v419_v12, %v243_v22 }
  0xa5   : > { %259 = vst [vmem:[%s164_s20 + $0x8] sm:$0xff] %v238_v23 }
  0xa6   : > { %261 = vst [vmem:[%s164_s20 + $0x18] sm:$0xff] %v244_v24  ;;  %v249_v25 = vpop.f32.mrf.mxu2  ;;  %v255_v26 = vpop.f32.mrf.mxu3 }
  0xa7   : > { %v250_v27 = vadd.f32 %v419_v12, %v249_v25  ;;  %v256_v28 = vadd.f32 %v419_v12, %v255_v26 }
  0xa9   : > { %263 = vst [vmem:[%s164_s20 + $0x28] sm:$0xff] %v250_v27 }
  0xaa   : > { %265 = vst [vmem:[%s164_s20 + $0x38] sm:$0xff] %v256_v28 }
  0xab   : > { %447 = shalt.err (!%p444_p3)
}
  0xac   : > { %s484_s10 = smov 128   ;;  %s485_s11 = smov 8  }
  0xad   : > { %378 = dma.vmem_to_hbm [thread:$0]  (%p544_p5), %s280_s28, 1024, %s282_s29, %s267_s16, %s484_s10, %s484_s10, %s485_s11  }
  0xae PF: > { %p384_p4 = scmp.ge.s32.totalorder %s482_s15, 2  ;;  %s296_s17 = sand.u32 1, %s470_s12  }
  0xaf   : > { %s297_s19 = scalar_lea.sflag [#allocation3], %s296_s17 }
  0xb0   : > { %p381_p7 = pnand %p384_p4, %p548_p6 }
  0xb2   : > { %p382_p8 = pneg %p381_p7 }
  0xb4   : > { %465 = dma.done.wait (%p382_p8), %s297_s19, 1024  }
  0xb5   : > { %467 = vsyncadd (%p382_p8), %s297_s19, 4294966272  ;;  %p13_p9 = scmp.ge.s32.totalorder %s531_s18, 6   ;;  %s623_s12 = smov %s474_s13 }
  0xb6   : > { %s624_s13 = smov %s478_s14  ;;  %s625_s14 = smov %s542_s21 }
  0xb7   : > { %s626_s15 = smov %s531_s18  ;;  %15 = sbr.rel (!%p13_p9) target bundleno = 3 (0x3), region = 67 }
  0xbc   :  { %303 = vsyncpa [#allocation3], 1 }
  0xbd   :  { %305 = vsyncpa [#allocation3 + $0x1], 1 }

</bundles_post_ra>
